<compile_context>
chip_gen: v7x
topology: tpu7x:2x2x1
jax: 0.10.0
libtpu: 0.0.40
codegen_flags: <defaults>
</compile_context>

<pallas_src>
import jax
import jax.numpy as jnp
import numpy as np
from jax.experimental import pallas as pl
from jax.experimental.pallas import tpu as pltpu

N_STATS = 8  # cols: [intersection, union, target_sum, bce_sum, mse_sum, 0, 0, 0]


def _make_stats_kernel(S, tile_s, needs_mask):
    """Kernel factory: closes over static spatial extent / tile size / masking."""

    def kernel(pred_ref, gt_ref, out_ref):
        k = pl.program_id(1)  # spatial (reduction) axis, last grid dim

        @pl.when(k == 0)
        def _():
            out_ref[...] = jnp.zeros_like(out_ref)

        x = pred_ref[...].astype(jnp.float32)   # raw logits
        g = gt_ref[...].astype(jnp.float32)

        # Shared transcendental: e = exp(-|x|) feeds both sigmoid and softplus.
        e = jnp.exp(-jnp.abs(x))
        inv = 1.0 / (1.0 + e)
        p = jnp.where(x >= 0, inv, e * inv)     # == sigmoid(x)
        p = jnp.maximum(p, 1e-7)                # clamp(min=1e-7); max=1 is a no-op for sigmoid
        # binary_cross_entropy_with_logits elementwise term
        bce = jnp.maximum(x, 0.0) - x * g + jnp.log1p(e)
        sq = (x - g) ** 2

        if needs_mask:
            # Tail tile of the cdiv grid: zero out contributions of padded lanes.
            col = jax.lax.broadcasted_iota(jnp.int32, x.shape, 1) + k * tile_s
            m = col < S
            zero = jnp.zeros_like(x)
            p = jnp.where(m, p, zero)
            g = jnp.where(m, g, zero)
            bce = jnp.where(m, bce, zero)
            sq = jnp.where(m, sq, zero)

        inter = jnp.sum(p * g, axis=-1, keepdims=True)
        psum = jnp.sum(p, axis=-1, keepdims=True)
        tsum = jnp.sum(g, axis=-1, keepdims=True)
        bsum = jnp.sum(bce, axis=-1, keepdims=True)
        msum = jnp.sum(sq, axis=-1, keepdims=True)
        union = psum + tsum                     # sum(p + g) without the extra per-elem add

        rows = x.shape[0]
        stats = jnp.concatenate(
            [inter, union, tsum, bsum, msum,
             jnp.zeros((rows, N_STATS - 5), jnp.float32)],
            axis=-1)
        out_ref[...] += stats                   # single stacked accumulate per step

    return kernel


def _choose_tiles(CB, S, in_itemsize_sum):
    """Pick (tile_cb, tile_s) from a VMEM budget that is safe on v5e/v6e/v7x."""
    # Row tiling: split rows when CB is large (feeds both TCs on v7x via the
    # "parallel" grid axis and bounds block size); keep (8,·)-aligned and an
    # exact divisor of CB so no row padding is needed.
    if CB > 256 and CB % 8 == 0:
        tile_cb = 256
        while CB % tile_cb:
            tile_cb -= 8
    else:
        tile_cb = CB
    # Spatial tiling: largest multiple of 128 whose double-buffered pred+gt
    # blocks fit ~24 MiB, capped at 2048 (>=85% of HBM roofline already).
    budget = 24 << 20
    bytes_per_lane = 2 * tile_cb * in_itemsize_sum   # 2 pipeline buffers
    max_lanes = max(128, (budget // max(bytes_per_lane, 1)) // 128 * 128)
    tile_s = int(min(2048, max_lanes))
    if S <= tile_s:
        tile_s = S                                   # full-extent block (always legal)
    return tile_cb, tile_s


def loss_stats(pred_2d, gt_2d):
    """pred_2d/gt_2d: (B*C, H*W) logits / targets -> (B*C, 8) f32 stats."""
    CB, S = pred_2d.shape
    itemsize_sum = pred_2d.dtype.itemsize + gt_2d.dtype.itemsize
    tile_cb, tile_s = _choose_tiles(CB, S, itemsize_sum)
    n_row = CB // tile_cb
    n_s = pl.cdiv(S, tile_s)
    needs_mask = (S % tile_s) != 0
    kernel = _make_stats_kernel(S, tile_s, needs_mask)
    return pl.pallas_call(
        kernel,
        out_shape=jax.ShapeDtypeStruct((CB, N_STATS), jnp.float32),
        grid_spec=pltpu.PrefetchScalarGridSpec(
            num_scalar_prefetch=0,
            grid=(n_row, n_s),
            in_specs=[pl.BlockSpec((tile_cb, tile_s), lambda i, k: (i, k)),
                      pl.BlockSpec((tile_cb, tile_s), lambda i, k: (i, k))],
            out_specs=pl.BlockSpec((tile_cb, N_STATS), lambda i, k: (i, 0)),
        ),
        compiler_params=pltpu.CompilerParams(
            dimension_semantics=("parallel", "arbitrary"),
            vmem_limit_bytes=48 * 1024 * 1024),
    )(pred_2d, gt_2d)


class Loss:
    """JAX/Pallas re-implementation of utils/LossUtils.py::Loss (is_softmax=False path)."""

    def __init__(self, num_classes, include_background, is_softmax,
                 loss_types=None, class_weight=None, loss_weight=None):
        supported = ('mse', 'bce', 'dice', 'gdice')
        for lt in loss_types:
            if lt not in supported:
                # TODO(synk): 'ce' (cross_entropy with class weights) not implemented in kernel.
                raise ValueError('unsupported loss type: {}'.format(lt))
        assert not is_softmax, \
            "kernel implements the sigmoid (is_softmax=False) path"  # TODO(synk): softmax path
        self.loss_types = loss_types
        start_channel = 0 if include_background or not is_softmax else 1
        end_channel = num_classes + 1 if is_softmax else num_classes
        self.channel_range = list(range(start_channel, end_channel))
        assert len(loss_types) == len(loss_weight)
        self.num_classes = num_classes
        self.include_background = include_background
        self.is_softmax = is_softmax
        self.class_weight = class_weight
        self.loss_weight = jnp.asarray(loss_weight, jnp.float32)

    def __len__(self):
        return len(self.loss_types)

    def __call__(self, pred, gt):
        B, C, H, W = pred.shape
        S = H * W
        eps = 1e-5
        # Free reshape (no HBM transpose): rows are b*C + c.  Channel selection
        # is applied on the C axis of the reshaped stats below.
        # Note: kernel upcasts internally, so bf16/int8 gt or bf16 pred from
        # upstream would halve HBM traffic with no kernel changes.
        pred_2d = pred.reshape(B * C, S)
        gt_2d = gt.reshape(B * C, S)

        stats = loss_stats(pred_2d, gt_2d).reshape(B, C, N_STATS)
        inter = stats[..., 0]     # (B, C)
        union = stats[..., 1]
        tsum = stats[..., 2]
        bce_sum = stats[..., 3]
        mse_sum = stats[..., 4]

        tgt = jnp.asarray(self.channel_range, jnp.int32)
        n_tgt = len(self.channel_range)
        total_elems = B * C * S

        loss_list = []
        for loss_type in self.loss_types:
            if loss_type == 'bce':
                loss_list.append(jnp.sum(bce_sum) / total_elems)
            elif loss_type == 'mse':
                loss_list.append(jnp.sum(mse_sum) / total_elems)
            elif loss_type == 'dice':
                i_c, u_c = inter[:, tgt], union[:, tgt]          # (B, n_tgt)
                lc = jnp.sum(1.0 - (2.0 * i_c + eps) / (u_c + eps), axis=0) / B
                if self.class_weight is None:
                    lc = lc / n_tgt
                else:
                    lc = lc * jnp.asarray(self.class_weight, jnp.float32)[tgt]
                loss_list.append(jnp.sum(lc))
            elif loss_type == 'gdice':
                i_c, u_c, t_c = inter[:, tgt], union[:, tgt], tsum[:, tgt]
                w = 1.0 / (t_c * t_c + eps)                      # weight_type='square'
                i_w, u_w = i_c * w, u_c * w + eps
                lc = jnp.sum(1.0 - 2.0 * (2.0 * i_w + eps) / (u_w + eps), axis=0) / B
                if self.class_weight is None:
                    lc = lc / n_tgt
                else:
                    lc = lc * jnp.asarray(self.class_weight, jnp.float32)[tgt]
                loss_list.append(jnp.sum(lc))
        loss = jnp.sum(jnp.stack(loss_list) * self.loss_weight)
        loss_dict = dict(zip(self.loss_types, loss_list))
        return loss, loss_dict


# ---------------- pure-JAX reference (mirrors the torch code) ----------------
def _ref_loss(pred, gt, channel_range, loss_types, loss_weight):
    B, C, H, W = pred.shape
    eps = 1e-5
    p = jnp.clip(jax.nn.sigmoid(pred), 1e-7, 1.0).astype(jnp.float32)
    pr = jnp.transpose(p, (1, 0, 2, 3)).reshape(C, B, -1)[jnp.asarray(channel_range)]
    gr = jnp.transpose(gt, (1, 0, 2, 3)).reshape(C, B, -1)[jnp.asarray(channel_range)]
    out = []
    for lt in loss_types:
        if lt == 'bce':
            out.append(jnp.mean(jnp.maximum(pred, 0) - pred * gt
                                + jnp.log1p(jnp.exp(-jnp.abs(pred)))))
        elif lt == 'mse':
            out.append(jnp.mean((pred - gt) ** 2))
        elif lt == 'dice':
            inter = jnp.sum(pr * gr, -1)
            union = jnp.sum(pr + gr, -1)
            lc = jnp.sum(1 - (2.0 * inter + eps) / (union + eps), -1) / B / len(channel_range)
            out.append(jnp.sum(lc))
        elif lt == 'gdice':
            ts = jnp.sum(gr, -1)
            w = 1.0 / (ts * ts + eps)
            inter = jnp.sum(pr * gr, -1) * w
            union = jnp.sum(pr + gr, -1) * w + eps
            lc = jnp.sum(1 - 2.0 * (2.0 * inter + eps) / (union + eps), -1) / B / len(channel_range)
            out.append(jnp.sum(lc))
    return jnp.sum(jnp.stack(out) * jnp.asarray(loss_weight))


def _run_case(key, B, C, H, W, loss_types, loss_weight):
    k1, k2 = jax.random.split(key)
    pred = jax.random.normal(k1, (B, C, H, W), jnp.float32)
    gt = (jax.random.uniform(k2, (B, C, H, W)) > 0.5).astype(jnp.float32)
    loss_mod = Loss(num_classes=C, include_background=True, is_softmax=False,
                    loss_types=loss_types, class_weight=None, loss_weight=loss_weight)
    loss, _ = loss_mod(pred, gt)
    jax.block_until_ready(loss)
    ref = _ref_loss(pred, gt, loss_mod.channel_range, loss_types, loss_weight)
    np.testing.assert_allclose(np.asarray(loss), np.asarray(ref), rtol=1e-4, atol=1e-5)


if __name__ == "__main__":
    key = jax.random.PRNGKey(0)
    loss_types = ['bce', 'mse', 'dice', 'gdice']
    loss_weight = [0.3, 0.2, 0.3, 0.2]

    # small case (single tile path)
    k_a, k_b = jax.random.split(key)
    _run_case(k_a, 2, 4, 16, 16, loss_types, loss_weight)
    # multi-tile case with a non-divisible spatial extent (exercises tail masking)
    _run_case(k_b, 2, 3, 48, 48, loss_types, loss_weight)

    print("KERNEL_OK")
</pallas_src>

<mosaic_0001>
module attributes {stable_mosaic.version = 11 : i64} {
  func.func @kernel(%arg0: i32, %arg1: i32, %arg2: memref<8x256xf32, #tpu.memory_space<vmem>>, %arg3: memref<8x256xf32, #tpu.memory_space<vmem>>, %arg4: memref<8x8xf32, #tpu.memory_space<vmem>>) attributes {dimension_semantics = [#tpu.dimension_semantics<parallel>, #tpu.dimension_semantics<arbitrary>], iteration_bounds = array<i64: 1, 1>, scalar_prefetch = 0 : i64, scratch_operands = 0 : i64, tpu.core_type = #tpu.core_type<tc>, window_params = [{transform_indices = @transform_0, window_bounds = array<i64: 8, 256>}, {transform_indices = @transform_1, window_bounds = array<i64: 8, 256>}, {transform_indices = @transform_2, window_bounds = array<i64: 8, 8>}]} {
    %c0_i32 = arith.constant 0 : i32
    %0 = arith.cmpi eq, %arg1, %c0_i32 : i32
    %1 = arith.extui %0 : i1 to i32
    %c0_i32_0 = arith.constant 0 : i32
    %2 = arith.cmpi ne, %1, %c0_i32_0 : i32
    scf.if %2 {
      %cst_19 = arith.constant 0.000000e+00 : f32
      %44 = vector.broadcast %cst_19 : f32 to vector<8x8xf32>
      %c0_20 = arith.constant 0 : index
      %c0_21 = arith.constant 0 : index
      %45 = vector.load %arg4[%c0_20, %c0_21] : memref<8x8xf32, #tpu.memory_space<vmem>>, vector<8x8xf32>
      tpu.vector_store %arg4[%c0_20, %c0_21], %44 {strides = array<i32>} : memref<8x8xf32, #tpu.memory_space<vmem>>, vector<8x8xf32>,
    } else {
    }
    %c0 = arith.constant 0 : index
    %c0_1 = arith.constant 0 : index
    %3 = vector.load %arg2[%c0, %c0_1] : memref<8x256xf32, #tpu.memory_space<vmem>>, vector<8x256xf32>
    %c0_2 = arith.constant 0 : index
    %c0_3 = arith.constant 0 : index
    %4 = vector.load %arg3[%c0_2, %c0_3] : memref<8x256xf32, #tpu.memory_space<vmem>>, vector<8x256xf32>
    %5 = math.absf %3 : vector<8x256xf32>
    %cst = arith.constant 0.000000e+00 : f32
    %6 = vector.broadcast %cst : f32 to vector<8x256xf32>
    %7 = arith.subf %6, %5 : vector<8x256xf32>
    %8 = math.exp %7 : vector<8x256xf32>
    %cst_4 = arith.constant 1.000000e+00 : f32
    %9 = vector.broadcast %cst_4 : f32 to vector<8x256xf32>
    %10 = arith.addf %9, %8 : vector<8x256xf32>
    %cst_5 = arith.constant 1.000000e+00 : f32
    %11 = vector.broadcast %cst_5 : f32 to vector<8x256xf32>
    %12 = arith.divf %11, %10 : vector<8x256xf32>
    %cst_6 = arith.constant 0.000000e+00 : f32
    %13 = vector.broadcast %cst_6 : f32 to vector<8x256xf32>
    %14 = arith.cmpf oge, %3, %13 : vector<8x256xf32>
    %15 = arith.mulf %8, %12 : vector<8x256xf32>
    %16 = arith.select %14, %12, %15 : vector<8x256xi1>, vector<8x256xf32>
    %cst_7 = arith.constant 1.000000e-07 : f32
    %17 = vector.broadcast %cst_7 : f32 to vector<8x256xf32>
    %18 = arith.maximumf %16, %17 : vector<8x256xf32>
    %cst_8 = arith.constant 0.000000e+00 : f32
    %19 = vector.broadcast %cst_8 : f32 to vector<8x256xf32>
    %20 = arith.maximumf %3, %19 : vector<8x256xf32>
    %21 = arith.mulf %3, %4 : vector<8x256xf32>
    %22 = arith.subf %20, %21 : vector<8x256xf32>
    %23 = math.log1p %8 : vector<8x256xf32>
    %24 = arith.addf %22, %23 : vector<8x256xf32>
    %25 = arith.subf %3, %4 : vector<8x256xf32>
    %26 = arith.mulf %25, %25 : vector<8x256xf32>
    %27 = arith.mulf %18, %4 : vector<8x256xf32>
    %cst_9 = arith.constant dense<0.000000e+00> : vector<8xf32>
    %28 = vector.multi_reduction <add>, %27, %cst_9 [1] : vector<8x256xf32> to vector<8xf32>
    %29 = vector.shape_cast %28 : vector<8xf32> to vector<8x1xf32>
    %cst_10 = arith.constant dense<0.000000e+00> : vector<8xf32>
    %30 = vector.multi_reduction <add>, %18, %cst_10 [1] : vector<8x256xf32> to vector<8xf32>
    %31 = vector.shape_cast %30 : vector<8xf32> to vector<8x1xf32>
    %cst_11 = arith.constant dense<0.000000e+00> : vector<8xf32>
    %32 = vector.multi_reduction <add>, %4, %cst_11 [1] : vector<8x256xf32> to vector<8xf32>
    %33 = vector.shape_cast %32 : vector<8xf32> to vector<8x1xf32>
    %cst_12 = arith.constant dense<0.000000e+00> : vector<8xf32>
    %34 = vector.multi_reduction <add>, %24, %cst_12 [1] : vector<8x256xf32> to vector<8xf32>
    %35 = vector.shape_cast %34 : vector<8xf32> to vector<8x1xf32>
    %cst_13 = arith.constant dense<0.000000e+00> : vector<8xf32>
    %36 = vector.multi_reduction <add>, %26, %cst_13 [1] : vector<8x256xf32> to vector<8xf32>
    %37 = vector.shape_cast %36 : vector<8xf32> to vector<8x1xf32>
    %38 = arith.addf %31, %33 : vector<8x1xf32>
    %cst_14 = arith.constant 0.000000e+00 : f32
    %39 = vector.broadcast %cst_14 : f32 to vector<8x3xf32>
    %40 = tpu.concatenate %29, %38, %33, %35, %37, %39 in 1 : vector<8x1xf32>, vector<8x1xf32>, vector<8x1xf32>, vector<8x1xf32>, vector<8x1xf32>, vector<8x3xf32> -> vector<8x8xf32>
    %c0_15 = arith.constant 0 : index
    %c0_16 = arith.constant 0 : index
    %41 = vector.load %arg4[%c0_15, %c0_16] : memref<8x8xf32, #tpu.memory_space<vmem>>, vector<8x8xf32>
    %42 = arith.addf %41, %40 : vector<8x8xf32>
    %c0_17 = arith.constant 0 : index
    %c0_18 = arith.constant 0 : index
    %43 = vector.load %arg4[%c0_17, %c0_18] : memref<8x8xf32, #tpu.memory_space<vmem>>, vector<8x8xf32>
    tpu.vector_store %arg4[%c0_17, %c0_18], %42 {strides = array<i32>} : memref<8x8xf32, #tpu.memory_space<vmem>>, vector<8x8xf32>,
    return
  }
  func.func @transform_0(%arg0: i32, %arg1: i32) -> (i32, i32) {
    %c0_i32 = arith.constant 0 : i32
    return %arg0, %arg1 : i32, i32
  }
  func.func @transform_1(%arg0: i32, %arg1: i32) -> (i32, i32) {
    %c0_i32 = arith.constant 0 : i32
    return %arg0, %arg1 : i32, i32
  }
  func.func @transform_2(%arg0: i32, %arg1: i32) -> (i32, i32) {
    %c0_i32 = arith.constant 0 : i32
    %c0_i32_0 = arith.constant 0 : i32
    return %arg0, %c0_i32 : i32, i32
  }
}

</mosaic_0001>

<bundles_post_ra>
// kernel: tpu_custom_call.1
= control target key start
LH: loop header
LB: loop body
LE: loop exit
PB: predicated region body
PF: predicated region fallthrough
CT: control target
= control target key end

     0   :  { %7 = vsyncpa [#allocation3], 0  ;;  %s297_s0 = inlined_call_operand.hbm [shape: f32[8,256], index: 0, kind: input, shape index: {}]   ;;  %s298_s1 = inlined_call_operand.hbm [shape: f32[8,256], index: 1, kind: input, shape index: {}]   ;;  %s299_s2 = inlined_call_operand.hbm [shape: f32[8,8], index: 2, kind: output, shape index: {}]  }
   0x1   :  { %8 = vsyncpa [#allocation6], 0 }
   0x2   :  { %9 = vsyncpa [#allocation4], 0  ;;  %s234_s9 = smov [#allocation2]   ;;  %s235_s11 = smov [#allocation5]  }
   0x3   :  { %s16_s10 = sshll.u32 %s234_s9, 4  ;;  %s26_s12 = sshll.u32 %s235_s11, 4  ;;  %s17_s10 = int_to_ptr.vmem [resolvable:$true] %s16_s10  ;;  %s27_s12 = int_to_ptr.vmem [resolvable:$true] %s26_s12 }
   0x4   :  { %s162_s15 = scalar_lea.hbm %s297_s0, 256 }
   0x5   :  { %p163_p0 = scmp.ne.s32.totalorder %s297_s0, %s162_s15  ;;  %p166_p1 = scmp.lt.u32.totalorder %s162_s15, %s297_s0 }
   0x7   :  { %p168_p2 = pnand %p166_p1, %p163_p0 }
   0x9   :  { %171 = shalt.err (!%p168_p2)
}
   0xa   :  { %s172_s20 = scalar_lea.vmem %s17_s10, 256  ;;  %p177_p4 = scmp.lt.s32.totalorder %s17_s10, %s17_s10 }
   0xb   :  { %p173_p3 = scmp.ne.s32.totalorder %s17_s10, %s172_s20  ;;  %p178_p5 = scmp.lt.s32.totalorder %s172_s20, %s172_s20 }
   0xd   :  { %p179_p6 = por %p178_p5, %p177_p4 }
   0xf   :  { %p180_p7 = pnand %p179_p6, %p173_p3 }
  0x11   :  { %183 = shalt.err (!%p180_p7)
}
  0x12   :  { %19 = dma.hbm_to_vmem [thread:$0]  %s297_s0, 256, %s17_s10, [#allocation3]  }
  0x13   :  { %s184_s25 = scalar_lea.hbm %s298_s1, 256 }
  0x14   :  { %p185_p8 = scmp.ne.s32.totalorder %s298_s1, %s184_s25  ;;  %p188_p9 = scmp.lt.u32.totalorder %s184_s25, %s298_s1 }
  0x16   :  { %p190_p10 = pnand %p188_p9, %p185_p8 }
  0x18   :  { %193 = shalt.err (!%p190_p10)
}
  0x19   :  { %s194_s30 = scalar_lea.vmem %s27_s12, 256  ;;  %p199_p12 = scmp.lt.s32.totalorder %s27_s12, %s27_s12 }
  0x1a   :  { %p195_p11 = scmp.ne.s32.totalorder %s27_s12, %s194_s30  ;;  %p200_p13 = scmp.lt.s32.totalorder %s194_s30, %s194_s30 }
  0x1c   :  { %p201_p0 = por %p200_p13, %p199_p12 }
  0x1e   :  { %p202_p1 = pnand %p201_p0, %p195_p11 }
  0x20   :  { %205 = shalt.err (!%p202_p1)
}
  0x21   :  { %29 = dma.hbm_to_vmem [thread:$0]  %s298_s1, 256, %s27_s12, [#allocation6]  }
  0x22   :  { %228 = dma.done.wait [#allocation3], 256  }
  0x23   :  { %229 = vsyncadd [#allocation3], 4294967040 }
  0x24   :  { %230 = dma.done.wait [#allocation6], 256  }
  0x25   :  { %231 = vsyncadd [#allocation6], 4294967040  ;;  %vm40_vm0 = vcmask 64512   ;;  %v236_v0 = vmov 0.0   ;;  %v42_v1 = vld [vmem:[#allocation2] sm:$0xff]  ;;  %v43_v2 = vld [vmem:[#allocation2 + $0x8] sm:$0xff] }
  0x26   :  { %41 = vst.msk [vmem:[#allocation7] sm:$0xff] %vm40_vm0, %v236_v0  ;;  %v46_v3 = vand.u32 2147483647, %v42_v1  ;;  %v47_v4 = vand.u32 2147483647, %v43_v2  ;;  %v44_v15 = vld [vmem:[#allocation5] sm:$0xff] }
  0x27   :  { %v45_v16 = vld [vmem:[#allocation5 + $0x8] sm:$0xff]  ;;  %v68_v18 = vmax.f32 %v42_v1, 0.0  ;;  %v70_v19 = vmul.f32 %v44_v15, %v42_v1  ;;  %v69_v22 = vmax.f32 %v43_v2, 0.0  ;;  %vm60_vm1 = vcmp.ge.f32.partialorder %v42_v1, 0.0  ;;  %s237_s1 = smov [#allocation7]  }
  0x28   :  { %v48_v5 = vsub.f32 0.0, %v46_v3  ;;  %v49_v6 = vsub.f32 0.0, %v47_v4  ;;  %v71_v23 = vmul.f32 %v45_v16, %v43_v2  ;;  %vm61_vm2 = vcmp.ge.f32.partialorder %v43_v2, 0.0  ;;  %s136_s4 = sshll.u32 %s237_s1, 4  ;;  %s137_s4 = int_to_ptr.vmem [resolvable:$true] %s136_s4 }
  0x29   :  { %v72_v31 = vsub.f32 %v68_v18, %v70_v19  ;;  %v94_v43 = vsub.f32 %v42_v1, %v44_v15  ;;  %v95_v44 = vsub.f32 %v43_v2, %v45_v16  ;;  %v106_v51 = vadd.f32 %v45_v16, %v44_v15  ;;  %s206_s5 = scalar_lea.vmem %s137_s4, 128  ;;  %p211_p3 = scmp.lt.s32.totalorder %s137_s4, %s137_s4 }
  0x2a   :  { %v50_v7 = vmul.f32 1.442695, %v48_v5  ;;  %v52_v8 = vmul.f32 1.442695, %v49_v6  ;;  %v73_v36 = vsub.f32 %v69_v22, %v71_v23  ;;  %vm116_vm5 = vcmask 7168   ;;  %p207_p2 = scmp.ne.s32.totalorder %s137_s4, %s206_s5  ;;  %p212_p4 = scmp.lt.s32.totalorder %s206_s5, %s206_s5 }
  0x2b   :  { %v96_v53 = vmul.f32 %v94_v43, %v94_v43  ;;  %v97_v54 = vmul.f32 %v95_v44, %v95_v44  ;;  %vm118_vm6 = vcmask 15360   ;;  %vm120_vm7 = vcmask 23552  }
  0x2c   :  { %150 = vpow2.f32 %v50_v7  ;;  %vm122_vm8 = vcmask 31744   ;;  %vm124_vm9 = vcmask 39936   ;;  %p213_p5 = por %p212_p4, %p211_p3 }
  0x2d   :  { %152 = vpow2.f32 %v52_v8  ;;  %v112_v56 = vadd.f32 %v97_v54, %v96_v53  ;;  %v126_v2 = vld [vmem:[#allocation7] sm:$0xff] }
  0x2e   :  { %p214_p6 = pnand %p213_p5, %p207_p2 }
  0x36   :  { %v151_v9 = vpop.eup %150 }
  0x37   :  { %v153_v10 = vpop.eup %152  ;;  %v54_v11 = vadd.f32 1.0, %v151_v9  ;;  %v77_v13 = vmul.f32 -0.5, %v151_v9  ;;  %v80_v20 = vand.u32 2147483647, %v151_v9 }
  0x38   :  { %v55_v12 = vadd.f32 1.0, %v153_v10  ;;  %v86_v14 = vmul.f32 -0.5, %v153_v10  ;;  %v89_v24 = vand.u32 2147483647, %v153_v10 }
  0x39   :  { %154 = vrcp.f32 %v54_v11  ;;  %v78_v17 = vadd.f32 1.0, %v77_v13  ;;  %vm278_vm3 = vcmp.lt.f32.partialorder %v80_v20, 0.0004427343 }
  0x3a   :  { %156 = vrcp.f32 %v55_v12  ;;  %v87_v21 = vadd.f32 1.0, %v86_v14  ;;  %vm90_vm4 = vcmp.lt.f32.partialorder %v89_v24, 0.0004427343 }
  0x3b   :  { %158 = vlog2.f32 %v54_v11  ;;  %v79_v28 = vmul.f32 %v151_v9, %v78_v17 }
  0x3c   :  { %160 = vlog2.f32 %v55_v12  ;;  %v88_v33 = vmul.f32 %v153_v10, %v87_v21 }
  0x43   :  { %v155_v25 = vpop.eup %154 }
  0x44   :  { %v157_v26 = vpop.eup %156  ;;  %v62_v27 = vmul.f32 %v155_v25, %v151_v9 }
  0x45   :  { %v159_v29 = vpop.eup %158  ;;  %v63_v30 = vmul.f32 %v157_v26, %v153_v10 }
  0x46   :  { %v161_v34 = vpop.eup %160  ;;  %v64_v35 = vsel %vm60_vm1, %v155_v25, %v62_v27  ;;  %v76_v37 = vmul.f32 0.6931472, %v159_v29 }
  0x47   :  { %v65_v38 = vsel %vm61_vm2, %v157_v26, %v63_v30  ;;  %v66_v39 = vmax.f32 %v64_v35, 1e-07  ;;  %v85_v40 = vmul.f32 0.6931472, %v161_v34 }
  0x48   :  { %v67_v41 = vmax.f32 %v65_v38, 1e-07  ;;  %v82_v42 = vsel %vm278_vm3, %v79_v28, %v76_v37 }
  0x49   :  { %v98_v45 = vmul.f32 %v66_v39, %v44_v15  ;;  %v91_v46 = vsel %vm90_vm4, %v88_v33, %v85_v40  ;;  %v92_v49 = vadd.f32 %v82_v42, %v72_v31 }
  0x4a   :  { %v103_v47 = vadd.f32 %v67_v41, %v66_v39  ;;  %v99_v48 = vmul.f32 %v67_v41, %v45_v16  ;;  %v93_v50 = vadd.f32 %v91_v46, %v73_v36 }
  0x4c   :  { %104 = vadd.xlane.f32.xlu0 %v103_v47  ;;  %v100_v52 = vadd.f32 %v99_v48, %v98_v45  ;;  %v109_v55 = vadd.f32 %v93_v50, %v92_v49 }
  0x4e   :  { %101 = vadd.xlane.f32.xlu1 %v100_v52 }
  0x50   :  { %107 = vadd.xlane.f32.xlu0 %v106_v51 }
  0x52   :  { %110 = vadd.xlane.f32.xlu1 %v109_v55 }
  0x54   :  { %113 = vadd.xlane.f32.xlu0 %v112_v56 }
  0xd9   :  { %v105_v57 = vpop.xlane.xlu0 %104 }
  0xdb   :  { %v102_v58 = vpop.xlane.xlu1 %101 }
  0xdd   :  { %v108_v59 = vpop.xlane.xlu0 %107 }
  0xde   :  { %v115_v60 = vadd.f32 %v108_v59, %v105_v57 }
  0xdf   :  { %v111_v61 = vpop.xlane.xlu1 %110 }
  0xe0   :  { %v117_v62 = vsel %vm116_vm5, %v102_v58, %v115_v60 }
  0xe1   :  { %v119_v63 = vsel %vm118_vm6, %v117_v62, %v108_v59  ;;  %v114_v0 = vpop.xlane.xlu0 %113 }
  0xe2   :  { %v121_v1 = vsel %vm120_vm7, %v119_v63, %v111_v61 }
  0xe3   :  { %v123_v3 = vsel %vm122_vm8, %v121_v1, %v114_v0 }
  0xe4   :  { %v125_v4 = vsel %vm124_vm9, %v123_v3, 0.0 }
  0xe5   :  { %v127_v5 = vadd.f32 %v126_v2, %v125_v4 }
  0xe7   :  { %129 = vst.msk [vmem:[#allocation7] sm:$0xff] %vm40_vm0, %v127_v5 }
  0xe8   :  { %217 = shalt.err (!%p214_p6)
}
  0xe9   :  { %s218_s8 = scalar_lea.hbm %s299_s2, 128 }
  0xea   :  { %p219_p7 = scmp.ne.s32.totalorder %s299_s2, %s218_s8  ;;  %p222_p8 = scmp.lt.u32.totalorder %s218_s8, %s299_s2 }
  0xec   :  { %p224_p9 = pnand %p222_p8, %p219_p7 }
  0xee   :  { %227 = shalt.err (!%p224_p9)
}
  0xef   :  { %139 = dma.vmem_to_hbm [thread:$0]  %s137_s4, 128, %s299_s2, [#allocation4]  }
  0xf0   :  { %232 = dma.done.wait [#allocation4], 128  }
  0xf1   :  { %233 = vsyncadd [#allocation4], 4294967168 }
  0xf2   :  { %143 = vsyncpa [#allocation3], 1 }
  0xf3   :  { %144 = vsyncpa [#allocation6], 1 }
  0xf4   :  { %145 = vsyncpa [#allocation4], 1 }

</bundles_post_ra>
